<compile_context>
chip_gen: v6e
topology: v6e:2x2x1
jax: 0.10.0
libtpu: 0.0.40
codegen_flags: <defaults>
</compile_context>

<pallas_src>
import jax
import jax.numpy as jnp
from jax import lax
from jax.experimental import pallas as pl
from jax.experimental.pallas import tpu as pltpu


def _round_up(n, m):
    return ((n + m - 1) // m) * m


def _device_kind():
    try:
        return jax.devices()[0].device_kind.lower()
    except Exception:
        return ""


def _chip_config():
    """(tile_cap, vmem_limit_bytes, has_bf16_eup) tuned per TPU generation."""
    kind = _device_kind()
    is_v7 = ("v7" in kind) or ("7x" in kind)
    has_bf16_eup = any(tag in kind for tag in ("v6", "v7", "7x"))  # v5e has no bf16 EUP
    if is_v7:
        return 512, 48 << 20, has_bf16_eup          # 64 MiB VMEM/TC: keep headroom
    if kind:
        return 1024, 64 << 20, has_bf16_eup         # 128 MiB VMEM chips (v5e / v6e)
    return 512, 32 << 20, False                     # unknown backend: conservative


def _pick_tile(s, cap):
    for t in (1024, 512, 256, 128):
        if t <= cap and s % t == 0:
            return t
    return s  # unreachable on the tiled path (S is padded to a multiple of 128)


# ----------------------------------------------------------------------------- fused
def _fused_kernel(x_ref, o_ref):
    x = x_ref[...]                                                    # (B, S, Dp)
    # scores[b,i,j] = <x[b,i], x[b,j]> — contraction over D, no explicit transpose.
    s = jnp.einsum("bid,bjd->bij", x, x, preferred_element_type=jnp.float32)
    # PyTorch F.softmax(dim=1): normalise over the query axis i (columns sum to 1).
    m = jnp.max(s, axis=1, keepdims=True)                             # (B, 1, S)
    p = jnp.exp(s - m)                                                # (B, S, S)
    # Fold 1/l into x (O(S*Dp)) instead of scaling the (S,S) weights (O(S^2)):
    #   ctx[b,i,:] = sum_j p[b,i,j] * x[b,j,:] / l[b,j]   (exact, no approx recip).
    inv_l = (1.0 / jnp.sum(p, axis=1))[:, :, None]                    # (B, S, 1) f32
    x_scaled = (x.astype(jnp.float32) * inv_l).astype(x.dtype)
    ctx = jnp.einsum("bij,bjd->bid", p.astype(x.dtype), x_scaled,
                     preferred_element_type=jnp.float32)              # (B, S, Dp)
    o_ref[...] = ctx.astype(o_ref.dtype)


def _self_attention_fused(xc, out_dtype, vmem_limit):
    B, S, Dp = xc.shape
    return pl.pallas_call(
        _fused_kernel,
        out_shape=jax.ShapeDtypeStruct((B, S, Dp), out_dtype),
        grid_spec=pltpu.PrefetchScalarGridSpec(
            num_scalar_prefetch=0,
            grid=(1,),
            in_specs=[pl.BlockSpec((B, S, Dp), lambda i: (0, 0, 0))],
            out_specs=pl.BlockSpec((B, S, Dp), lambda i: (0, 0, 0)),
        ),
        compiler_params=pltpu.CompilerParams(
            dimension_semantics=("arbitrary",),
            vmem_limit_bytes=vmem_limit,
        ),
    )(xc)


# ----------------------------------------------------------------------------- tiled
def _make_lse_kernel(tq, mask_rows, resident):
    """Pass 1: per-key-column logsumexp, streamed over query tiles (grid axis 2)."""
    def kernel(xk_ref, xq_ref, lse_ref, m_sc, l_sc):
        q = pl.program_id(2)

        @pl.when(q == 0)
        def _():
            m_sc[...] = jnp.full_like(m_sc, -jnp.inf)
            l_sc[...] = jnp.zeros_like(l_sc)

        xk = xk_ref[0]                                                # (TK, Dp)
        if resident:
            # xq_ref holds the full (1, S, Dp) sequence; slice the current tile.
            q0 = pl.multiple_of(q * tq, tq)
            xq = xq_ref[0, pl.ds(q0, tq), :]                          # (TQ, Dp)
        else:
            xq = xq_ref[0]                                            # (TQ, Dp)
        s = lax.dot_general(xq, xk, (((1,), (1,)), ((), ())),
                            preferred_element_type=jnp.float32)       # (TQ, TK)
        if mask_rows is not None:
            # Padded query rows must not contribute to the column normalisation.
            row = q * tq + lax.broadcasted_iota(jnp.int32, (tq, 1), 0)
            s = jnp.where(row < mask_rows, s, -jnp.inf)
        m_new = jnp.maximum(m_sc[...], jnp.max(s, axis=0, keepdims=True))  # (1, TK)
        l_sc[...] = l_sc[...] * jnp.exp(m_sc[...] - m_new) + \
            jnp.sum(jnp.exp(s - m_new), axis=0, keepdims=True)
        m_sc[...] = m_new

        @pl.when(q == pl.num_programs(2) - 1)
        def _():
            lse_ref[0] = m_sc[...] + jnp.log(l_sc[...])

    return kernel


def _make_ctx_kernel(tk, resident, use_bf16_exp):
    """Pass 2: ctx[i] += exp(s[i,j] - lse_j) @ x[j], accumulated over key tiles."""
    def kernel(xq_ref, xk_ref, lse_ref, o_ref, acc_sc):
        k = pl.program_id(2)

        @pl.when(k == 0)
        def _():
            acc_sc[...] = jnp.zeros_like(acc_sc)

        xq = xq_ref[0]                                                # (TQ, Dp)
        if resident:
            # xk_ref holds the full (1, S, Dp) sequence; slice the current key tile.
            k0 = pl.multiple_of(k * tk, tk)
            xk = xk_ref[0, pl.ds(k0, tk), :]                          # (TK, Dp)
        else:
            xk = xk_ref[0]                                            # (TK, Dp)
        lse = lse_ref[0]                                              # (1, TK)
        s = lax.dot_general(xq, xk, (((1,), (1,)), ((), ())),
                            preferred_element_type=jnp.float32)       # (TQ, TK)
        # exp(s - lse) IS the softmax weight: the 1/l is folded into the exponent.
        if use_bf16_exp:
            # bf16 EUP (v6e/v7x): halves the EUP-bound exp and removes the f32->bf16
            # VPU cast of the (TQ, TK) tile.
            p = jnp.exp((s - lse).astype(jnp.bfloat16))
        else:
            p = jnp.exp(s - lse).astype(xk.dtype)
        acc_sc[...] += jnp.dot(p, xk, preferred_element_type=jnp.float32)  # (TQ, Dp)

        @pl.when(k == pl.num_programs(2) - 1)
        def _():
            o_ref[0] = acc_sc[...].astype(o_ref.dtype)

    return kernel


def _self_attention_tiled(xc, out_dtype, s_real, *, tile_cap, vmem_limit, use_bf16_exp):
    B, Sp, Dp = xc.shape                       # Sp is already a multiple of 128
    t = _pick_tile(Sp, tile_cap)
    n = Sp // t
    mask_rows = s_real if s_real != Sp else None

    # Keep the inner-axis x operand resident in VMEM (full sequence, batch-only
    # index_map) when its double-buffered block leaves >= half the budget for the
    # per-tile blocks and (t, t) f32 temporaries.  Cuts x HBM reads to ~1 per pass.
    itemsize = xc.dtype.itemsize
    resident = 2 * Sp * Dp * itemsize <= vmem_limit // 2

    # ---- pass 1: lse[b, 0, j] = log sum_i exp(scores[b, i, j]) -----------------
    if resident:
        xq_spec = pl.BlockSpec((1, Sp, Dp), lambda b, k, q: (b, 0, 0))
    else:
        xq_spec = pl.BlockSpec((1, t, Dp), lambda b, k, q: (b, q, 0))
    lse = pl.pallas_call(
        _make_lse_kernel(t, mask_rows, resident),
        out_shape=jax.ShapeDtypeStruct((B, 1, Sp), jnp.float32),
        grid_spec=pltpu.PrefetchScalarGridSpec(
            num_scalar_prefetch=0,
            grid=(B, n, n),
            in_specs=[pl.BlockSpec((1, t, Dp), lambda b, k, q: (b, k, 0)),
                      xq_spec],
            out_specs=pl.BlockSpec((1, 1, t), lambda b, k, q: (b, 0, k)),
            scratch_shapes=[pltpu.VMEM((1, t), jnp.float32),
                            pltpu.VMEM((1, t), jnp.float32)],
        ),
        compiler_params=pltpu.CompilerParams(
            dimension_semantics=("parallel", "parallel", "arbitrary"),
            vmem_limit_bytes=vmem_limit,
        ),
    )(xc, xc)

    # ---- pass 2: context accumulation over key tiles ---------------------------
    if resident:
        xk_spec = pl.BlockSpec((1, Sp, Dp), lambda b, q, k: (b, 0, 0))
    else:
        xk_spec = pl.BlockSpec((1, t, Dp), lambda b, q, k: (b, k, 0))
    # lse block per key tile is tiny (t*4 bytes) — streaming it is free; no need for
    # a dynamic lane-offset slice of a resident copy.
    lse_spec = pl.BlockSpec((1, 1, t), lambda b, q, k: (b, 0, k))
    return pl.pallas_call(
        _make_ctx_kernel(t, resident, use_bf16_exp),
        out_shape=jax.ShapeDtypeStruct((B, Sp, Dp), out_dtype),
        grid_spec=pltpu.PrefetchScalarGridSpec(
            num_scalar_prefetch=0,
            grid=(B, n, n),
            in_specs=[pl.BlockSpec((1, t, Dp), lambda b, q, k: (b, q, 0)),
                      xk_spec, lse_spec],
            out_specs=pl.BlockSpec((1, t, Dp), lambda b, q, k: (b, q, 0)),
            scratch_shapes=[pltpu.VMEM((t, Dp), jnp.float32)],
        ),
        compiler_params=pltpu.CompilerParams(
            dimension_semantics=("parallel", "parallel", "arbitrary"),
            vmem_limit_bytes=vmem_limit,
        ),
    )(xc, xc, lse)


# --------------------------------------------------------------------------- wrapper
def self_attention(x, *, compute_dtype=jnp.bfloat16, fused_bytes_limit=8 << 20):
    """Pallas TPU forward of the PyTorch SelfAttention module.

    compute_dtype:     MXU operand dtype (accumulation is always f32).
    fused_bytes_limit: if the full f32 score tensor is at most this many bytes, run
                       the single-grid-step fused kernel; else the tiled two-pass
                       path.  Pass 0 to force the tiled path.
    """
    B, S, D = x.shape
    out_dtype = x.dtype
    tile_cap, vmem_limit, has_bf16_eup = _chip_config()

    # Lane-dense last dim: pad D up to a multiple of 128.  Zero features do not
    # change the scores; padded output columns are zero and sliced off below.
    # TODO(synk): benchmark an unpadded-D variant (D==full-dim block is legal under
    # the (8,128) rule); padding doubles x HBM traffic where HBM co-binds (v5e/v6e).
    Dp = _round_up(D, 128)
    xp = x if Dp == D else jnp.pad(x, ((0, 0), (0, 0), (0, Dp - D)))
    xc = xp.astype(compute_dtype)

    if B * S * S * 4 <= fused_bytes_limit:
        out = _self_attention_fused(xc, out_dtype, vmem_limit)
        return out if Dp == D else out[:, :, :D]

    # Tiled path: pad S to a multiple of 128; padded query rows are masked to -inf
    # before the per-key-column logsumexp (padded key rows are zero -> contribute
    # nothing to the context), and padded output rows are sliced off.
    Sp = _round_up(S, 128)
    if Sp != S:
        xc = jnp.pad(xc, ((0, 0), (0, Sp - S), (0, 0)))
    is_bf16 = (jax.dtypes.canonicalize_dtype(compute_dtype)
               == jax.dtypes.canonicalize_dtype(jnp.bfloat16))
    out = _self_attention_tiled(xc, out_dtype, S, tile_cap=tile_cap,
                                vmem_limit=vmem_limit,
                                use_bf16_exp=is_bf16 and has_bf16_eup)
    out = out[:, :S, :]
    return out if Dp == D else out[:, :, :D]


def self_attention_ref(x):
    # Pure-JAX reference matching the PyTorch module semantics.
    w = jnp.einsum("bid,bjd->bij", x, x, precision=jax.lax.Precision.HIGHEST)
    w = jax.nn.softmax(w, axis=1)          # PyTorch F.softmax(dim=1)
    return jnp.einsum("bij,bjd->bid", w, x, precision=jax.lax.Precision.HIGHEST)


if __name__ == "__main__":
    key = jax.random.PRNGKey(0)

    # Shapes implied by the module's forward: (batch, seq_len, hidden).
    B, S, D = 2, 8, 32
    x = jax.random.normal(key, (B, S, D), dtype=jnp.float32)
    ref = self_attention_ref(x)

    # 1) Default path: bf16 MXU operands, fused single-grid-step kernel.
    out = jax.block_until_ready(self_attention(x))
    assert out.shape == (B, S, D)
    assert jnp.allclose(out, ref, atol=1e-1, rtol=1e-1), "bf16 fused mismatch"

    # 2) Fused kernel, f32 operands — exact normalisation now, tight tolerance.
    out_f32 = jax.block_until_ready(self_attention(x, compute_dtype=jnp.float32))
    assert jnp.allclose(out_f32, ref, atol=2e-3, rtol=2e-3), "f32 fused mismatch"

    # 3) Tiled path (forced), f32 operands; exercises S-padding + query-row masking
    #    (S=8 is padded to 128).
    out_tiled = jax.block_until_ready(
        self_attention(x, compute_dtype=jnp.float32, fused_bytes_limit=0))
    assert jnp.allclose(out_tiled, ref, atol=2e-3, rtol=2e-3), "f32 tiled mismatch"

    # 4) Tiled multi-tile shape with D padding (S=384 -> 3x3 tiles of 128, D=64 -> 128).
    x2 = jax.random.normal(jax.random.PRNGKey(0), (2, 384, 64), dtype=jnp.float32)
    ref2 = self_attention_ref(x2)
    out2 = jax.block_until_ready(
        self_attention(x2, compute_dtype=jnp.float32, fused_bytes_limit=0))
    assert jnp.allclose(out2, ref2, atol=2e-3, rtol=2e-3), "f32 tiled (large) mismatch"

    # 5) Tiled path, bf16 operands (bf16 exp on v6e/v7x) at the multi-tile shape.
    out2_bf = jax.block_until_ready(self_attention(x2, fused_bytes_limit=0))
    assert jnp.allclose(out2_bf, ref2, atol=1e-1, rtol=1e-1), "bf16 tiled (large) mismatch"

    # 6) Non-multiple-of-128 S on the tiled path (S=300 -> padded to 384, masked).
    x3 = jax.random.normal(jax.random.PRNGKey(0), (2, 300, 64), dtype=jnp.float32)
    ref3 = self_attention_ref(x3)
    out3 = jax.block_until_ready(
        self_attention(x3, compute_dtype=jnp.float32, fused_bytes_limit=0))
    assert jnp.allclose(out3, ref3, atol=2e-3, rtol=2e-3), "f32 tiled (padded-S) mismatch"
    out3_bf = jax.block_until_ready(self_attention(x3, fused_bytes_limit=0))
    assert jnp.allclose(out3_bf, ref3, atol=1e-1, rtol=1e-1), "bf16 tiled (padded-S) mismatch"

    print("KERNEL_OK")
</pallas_src>

<mosaic_0001>
module attributes {stable_mosaic.version = 11 : i64} {
  func.func @_fused_kernel(%arg0: i32, %arg1: memref<2x8x128xbf16, #tpu.memory_space<vmem>>, %arg2: memref<2x8x128xf32, #tpu.memory_space<vmem>>) attributes {dimension_semantics = [#tpu.dimension_semantics<arbitrary>], iteration_bounds = array<i64: 1>, scalar_prefetch = 0 : i64, scratch_operands = 0 : i64, tpu.core_type = #tpu.core_type<tc>, window_params = [{pipeline_mode = #tpu.pipeline_mode<synchronous>, transform_indices = @transform_0, window_bounds = array<i64: 2, 8, 128>}, {pipeline_mode = #tpu.pipeline_mode<synchronous>, transform_indices = @transform_1, window_bounds = array<i64: 2, 8, 128>}]} {
    %c0 = arith.constant 0 : index
    %c0_0 = arith.constant 0 : index
    %c0_1 = arith.constant 0 : index
    %0 = vector.load %arg1[%c0, %c0_0, %c0_1] : memref<2x8x128xbf16, #tpu.memory_space<vmem>>, vector<2x8x128xbf16>
    "tpu.trace_start"() <{level = 10 : i32, message = "bid,bjd->bij"}> : () -> ()
    %cst = arith.constant dense<0.000000e+00> : vector<2x8x8xf32>
    %1 = tpu.matmul %0, %0, %cst {dimension_numbers = #tpu.dot_dimension_numbers<[2], [2], [1], [1], [0, 0, 0, 1, 1, 1], [0], [0]>} : vector<2x8x128xbf16>, vector<2x8x128xbf16>, vector<2x8x8xf32> -> vector<2x8x8xf32>
    "tpu.trace_stop"() : () -> ()
    %cst_2 = arith.constant dense<0xFF800000> : vector<2x8xf32>
    %2 = vector.multi_reduction <maximumf>, %1, %cst_2 [1] : vector<2x8x8xf32> to vector<2x8xf32>
    %3 = vector.shape_cast %2 : vector<2x8xf32> to vector<2x1x8xf32>
    %4 = vector.broadcast %3 : vector<2x1x8xf32> to vector<2x8x8xf32>
    %5 = arith.subf %1, %4 : vector<2x8x8xf32>
    %6 = math.exp %5 : vector<2x8x8xf32>
    %cst_3 = arith.constant dense<0.000000e+00> : vector<2x8xf32>
    %7 = vector.multi_reduction <add>, %6, %cst_3 [1] : vector<2x8x8xf32> to vector<2x8xf32>
    %cst_4 = arith.constant 1.000000e+00 : f32
    %8 = vector.broadcast %cst_4 : f32 to vector<2x8xf32>
    %9 = arith.divf %8, %7 : vector<2x8xf32>
    %10 = vector.shape_cast %9 : vector<2x8xf32> to vector<2x8x1xf32>
    %11 = arith.extf %0 : vector<2x8x128xbf16> to vector<2x8x128xf32>
    %12 = vector.broadcast %10 : vector<2x8x1xf32> to vector<2x8x128xf32>
    %13 = arith.mulf %11, %12 : vector<2x8x128xf32>
    %14 = arith.truncf %13 : vector<2x8x128xf32> to vector<2x8x128xbf16>
    %15 = arith.truncf %6 : vector<2x8x8xf32> to vector<2x8x8xbf16>
    "tpu.trace_start"() <{level = 10 : i32, message = "bij,bjd->bid"}> : () -> ()
    %cst_5 = arith.constant dense<0.000000e+00> : vector<2x8x128xf32>
    %16 = tpu.matmul %15, %14, %cst_5 {dimension_numbers = #tpu.dot_dimension_numbers<[2], [1], [1], [2], [0, 0, 0, 1, 1, 2], [0], [0]>} : vector<2x8x8xbf16>, vector<2x8x128xbf16>, vector<2x8x128xf32> -> vector<2x8x128xf32>
    "tpu.trace_stop"() : () -> ()
    %c0_6 = arith.constant 0 : index
    %c0_7 = arith.constant 0 : index
    %c0_8 = arith.constant 0 : index
    %17 = vector.load %arg2[%c0_6, %c0_7, %c0_8] : memref<2x8x128xf32, #tpu.memory_space<vmem>>, vector<2x8x128xf32>
    tpu.vector_store %arg2[%c0_6, %c0_7, %c0_8], %16 {strides = array<i32>} : memref<2x8x128xf32, #tpu.memory_space<vmem>>, vector<2x8x128xf32>,
    return
  }
  func.func @transform_0(%arg0: i32) -> (i32, i32, i32) {
    %c0_i32 = arith.constant 0 : i32
    %c0_i32_0 = arith.constant 0 : i32
    %c0_i32_1 = arith.constant 0 : i32
    %c0_i32_2 = arith.constant 0 : i32
    return %c0_i32, %c0_i32_0, %c0_i32_1 : i32, i32, i32
  }
  func.func @transform_1(%arg0: i32) -> (i32, i32, i32) {
    %c0_i32 = arith.constant 0 : i32
    %c0_i32_0 = arith.constant 0 : i32
    %c0_i32_1 = arith.constant 0 : i32
    %c0_i32_2 = arith.constant 0 : i32
    return %c0_i32, %c0_i32_0, %c0_i32_1 : i32, i32, i32
  }
}

</mosaic_0001>

<bundles_post_ra>
// kernel: tpu_custom_call.1
= control target key start
LH: loop header
LB: loop body
LE: loop exit
PB: predicated region body
PF: predicated region fallthrough
CT: control target
= control target key end

     0   :  { %6 = vsyncpa [#allocation3], 0  ;;  %s405_s0 = inlined_call_operand.hbm [shape: bf16[2,8,128], index: 0, kind: input, shape index: {}]   ;;  %s406_s1 = inlined_call_operand.hbm [shape: f32[2,8,128], index: 1, kind: output, shape index: {}]  }
   0x1   :  { %7 = vsyncpa [#allocation4], 0  ;;  %s365_s6 = smov [#allocation2]  }
   0x2   :  { %s13_s7 = sshll.u32 %s365_s6, 4  ;;  %s14_s7 = int_to_ptr.vmem [resolvable:$true] %s13_s7 }
   0x3   :  { %s329_s8 = scalar_lea.vmem %s14_s7, 128  ;;  %p334_p1 = scmp.lt.s32.totalorder %s14_s7, %s14_s7 }
   0x4   :  { %p330_p0 = scmp.ne.s32.totalorder %s14_s7, %s329_s8  ;;  %p335_p2 = scmp.lt.s32.totalorder %s329_s8, %s329_s8 }
   0x6   :  { %p336_p3 = por %p335_p2, %p334_p1 }
   0x8   :  { %p337_p4 = pnand %p336_p3, %p330_p0 }
   0xa   :  { %340 = shalt.err (!%p337_p4)
}
   0xb   :  { %s366_s9 = smov 64   ;;  %s367_s10 = smov 4  }
   0xc   :  { %19 = dma.hbm_to_vmem [thread:$0]  %s405_s0, 128, %s14_s7, [#allocation3], %s366_s9, %s366_s9, %s367_s10  }
   0xd   :  { %361 = dma.done.wait [#allocation3], 128  }
   0xe   :  { %362 = vsyncadd [#allocation3], 4294967168  ;;  %v368_v0 = vmov 0.0   ;;  %vm369_vm0 = vmmov 0   ;;  %v386_v1 = vld [vmem:[#allocation2] sm:$0xf] }
   0xf   :  { %281 = vmatprep.subr.bf16.mxu0 %v368_v0  ;;  %287 = vmatprep.subr.bf16.mxu1 %v368_v0  ;;  %v388_v2 = vld [vmem:[#allocation2 + $0x4] sm:$0xf]  ;;  %vm106_vm1 = vcmask 64512   ;;  %v151_v47 = vunpack.c.l.bf16 %v386_v1  ;;  %vm162_vm2 = vcmask 1043456   ;;  %s370_s0 = smov [#allocation5]  }
  0x10   :  { %283 = vmatprep.mubr.msk.bf16.mxu0 %vm369_vm0, %v368_v0  ;;  %289 = vmatprep.mubr.msk.bf16.mxu1 %vm369_vm0, %v368_v0  ;;  %v152_v50 = vunpack.c.l.bf16 %v388_v2  ;;  %s259_s13 = sshll.u32 %s370_s0, 4  ;;  %s260_s13 = int_to_ptr.vmem [resolvable:$true] %s259_s13 }
  0x11   :  { %282 = vmatpush3.bf16.xpose.msra.mxu0 %v386_v1  ;;  %288 = vmatpush3.bf16.xpose.msra.mxu1 %v388_v2  ;;  %s341_s14 = scalar_lea.vmem %s260_s13, 256  ;;  %p346_p6 = scmp.lt.s32.totalorder %s260_s13, %s260_s13 }
  0x12   :  { %293 = vmatprep.subr.bf16.mxu0 %v368_v0  ;;  %299 = vmatprep.subr.bf16.mxu1 %v368_v0  ;;  %p342_p5 = scmp.ne.s32.totalorder %s260_s13, %s341_s14  ;;  %p347_p7 = scmp.lt.s32.totalorder %s341_s14, %s341_s14 }
  0x14   :  { %p348_p8 = por %p347_p7, %p346_p6 }
  0x16   :  { %p349_p9 = pnand %p348_p8, %p342_p5 }
  0x18   :  { %284 = vmatmul.mubr.bf16.vlgmr.msra.gmra.mxu0 %v386_v1  ;;  %290 = vmatmul.mubr.bf16.vlgmr.msra.gmra.mxu1 %v388_v2 }
  0x19   :  { %295 = vmatprep.mubr.msk.bf16.mxu0 %vm369_vm0, %v368_v0  ;;  %301 = vmatprep.mubr.msk.bf16.mxu1 %vm369_vm0, %v368_v0 }
  0xd8   :  { %v60_v3 = vpop.f32.mrf.mxu0  ;;  %v100_v4 = vpop.f32.mrf.mxu1 }
  0xd9   :  { %v107_v5 = vsel %vm106_vm1, %v60_v3, -inf  ;;  %v114_v6 = vsel %vm106_vm1, %v100_v4, -inf }
  0xda   :  { %v108_v7 = vrot.slane %v107_v5, 4  ;;  %v115_v8 = vrot.slane %v114_v6, 4  ;;  %v285_v9 = vpop.f32.mrf.mxu0  ;;  %v291_v10 = vpop.f32.mrf.mxu1 }
  0xdc   :  { %v109_v11 = vmax.f32 %v107_v5, %v108_v7  ;;  %v116_v12 = vmax.f32 %v114_v6, %v115_v8  ;;  %v63_v13 = vpop.f32.mrf.mxu0  ;;  %v103_v14 = vpop.f32.mrf.mxu1 }
  0xde   :  { %v110_v15 = vrot.slane %v109_v11, 2  ;;  %v117_v16 = vrot.slane %v116_v12, 2  ;;  %v286_v17 = vpop.f32.mrf.mxu0  ;;  %v292_v18 = vpop.f32.mrf.mxu1 }
  0xe0   :  { %v111_v19 = vmax.f32 %v109_v11, %v110_v15  ;;  %v118_v20 = vmax.f32 %v116_v12, %v117_v16 }
  0xe2   :  { %v112_v21 = vrot.slane %v111_v19, 1  ;;  %v119_v22 = vrot.slane %v118_v20, 1 }
  0xe4   :  { %v113_v23 = vmax.f32 %v111_v19, %v112_v21  ;;  %v120_v24 = vmax.f32 %v118_v20, %v119_v22 }
  0xe6   :  { %v121_v25 = vsub.f32 %v60_v3, %v113_v23  ;;  %v122_v26 = vsub.f32 %v100_v4, %v120_v24 }
  0xe8   :  { %v123_v27 = vmul.f32 1.442695, %v121_v25  ;;  %v125_v28 = vmul.f32 1.442695, %v122_v26 }
  0xea   :  { %313 = vpow2.f32 %v123_v27 }
  0xeb   :  { %315 = vpow2.f32 %v125_v28 }
  0xf7   :  { %v314_v29 = vpop.eup %313 }
  0xf8   :  { %v316_v30 = vpop.eup %315  ;;  %v127_v31 = vsel %vm106_vm1, %v314_v29, 0.0  ;;  %v157_v56 = vpack.c.bf16 %v314_v29, %v314_v29 }
  0xf9   :  { %v134_v32 = vsel %vm106_vm1, %v316_v30, 0.0  ;;  %v128_v33 = vrot.slane %v127_v31, 4  ;;  %v158_v58 = vpack.c.bf16 %v316_v30, %v316_v30 }
  0xfa   :  { %v135_v34 = vrot.slane %v134_v32, 4 }
  0xfb   :  { %v129_v35 = vadd.f32 %v128_v33, %v127_v31 }
  0xfc   :  { %v136_v36 = vadd.f32 %v135_v34, %v134_v32 }
  0xfd   :  { %v130_v37 = vrot.slane %v129_v35, 2 }
  0xfe   :  { %v137_v38 = vrot.slane %v136_v36, 2 }
  0xff   :  { %v131_v39 = vadd.f32 %v130_v37, %v129_v35 }
 0x100   :  { %v138_v40 = vadd.f32 %v137_v38, %v136_v36 }
 0x101   :  { %v132_v41 = vrot.slane %v131_v39, 1 }
 0x102   :  { %v139_v42 = vrot.slane %v138_v40, 1 }
 0x103   :  { %v133_v43 = vadd.f32 %v132_v41, %v131_v39 }
 0x104   :  { %v140_v44 = vadd.f32 %v139_v42, %v138_v40 }
 0x105   :  { %317 = vrcp.f32 %v133_v43 }
 0x106   :  { %319 = vrcp.f32 %v140_v44 }
 0x112   :  { %v318_v45 = vpop.eup %317 }
 0x113   :  { %146 = vbcast.lane.b32.xlu0 %v318_v45, 256  ;;  %v320_v46 = vpop.eup %319 }
 0x117   :  { %149 = vbcast.lane.b32.xlu0 %v320_v46, 256 }
 0x185   :  { %v147_v48 = vpop.permute.xlu0 %146 }
 0x186   :  { %v153_v49 = vmul.f32 %v151_v47, %v147_v48 }
 0x188   :  { %v155_v51 = vpack.c.bf16 %v153_v49, %v153_v49 }
 0x189   :  { %v150_v52 = vpop.permute.xlu0 %149 }
 0x18a   :  { %v164_v53 = vsel %vm162_vm2, %v155_v51, 0  ;;  %v154_v54 = vmul.f32 %v152_v50, %v150_v52 }
 0x18b   :  { %294 = vmatpush3.bf16.msra.mxu0 %v164_v53 }
 0x18c   :  { %v156_v55 = vpack.c.bf16 %v154_v54, %v154_v54 }
 0x18e   :  { %v210_v57 = vsel %vm162_vm2, %v156_v55, 0  ;;  %296 = vmatmul.mubr.msk.bf16.vlgmr.msra.gmra.mxu0 %vm106_vm1, %v157_v56 }
 0x18f   :  { %300 = vmatpush3.bf16.msra.mxu1 %v210_v57 }
 0x192   :  { %302 = vmatmul.mubr.msk.bf16.vlgmr.msra.gmra.mxu1 %vm106_vm1, %v158_v58 }
 0x24e   :  { %v200_v59 = vpop.f32.mrf.mxu0 }
 0x24f   :  { %252 = vst [vmem:[#allocation5] sm:$0xff] %v200_v59 }
 0x250   :  { %v297_v60 = vpop.f32.mrf.mxu0 }
 0x252   :  { %v203_v61 = vpop.f32.mrf.mxu0  ;;  %v246_v62 = vpop.f32.mrf.mxu1 }
 0x253   :  { %253 = vst [vmem:[#allocation5 + $0x8] sm:$0xff] %v246_v62 }
 0x254   :  { %v298_v63 = vpop.f32.mrf.mxu0  ;;  %v303_v0 = vpop.f32.mrf.mxu1 }
 0x255   :  { %352 = shalt.err (!%p349_p9)
}
 0x256   :  { %s371_s15 = smov 128   ;;  %s372_s16 = smov 8   ;;  %v249_v1 = vpop.f32.mrf.mxu1 }
 0x257   :  { %265 = dma.vmem_to_hbm [thread:$0]  %s260_s13, 256, %s406_s1, [#allocation4], %s371_s15, %s371_s15, %s372_s16  }
 0x258   :  { %v304_v2 = vpop.f32.mrf.mxu1 }
 0x259   :  { %363 = dma.done.wait [#allocation4], 256  }
 0x25a   :  { %364 = vsyncadd [#allocation4], 4294967040 }
 0x25b   :  { %269 = vsyncpa [#allocation3], 1 }
 0x25c   :  { %270 = vsyncpa [#allocation4], 1 }

</bundles_post_ra>
